<compile_context>
chip_gen: v7x
topology: tpu7x:2x2x1
jax: 0.10.0
libtpu: 0.0.40
codegen_flags: <defaults>
</compile_context>

<pallas_src>
import jax
import jax.numpy as jnp
from jax.experimental import pallas as pl
from jax.experimental.pallas import tpu as pltpu

# ---------------- configuration (consistent with the module defaults) --------
NUM_LAYERS = 4
IN_DIM = 8            # eigenfunction feature dim
HIDDEN_DIM = 32
SKIP_LAYER_IDX = 2
OUT_DIM = 3           # RGB_COLOR_DIM
TILE_N = 512          # points per grid step (lane-dense)
N_POINTS = 1024       # 2 grid steps -> even grid for v7x megacore


# ---------------------------- Pallas kernel ----------------------------------
def texture_field_kernel(
    x_ref,      # (IN_DIM, TILE_N)            input features, points on lanes
    wx_ref,     # (2*HIDDEN, IN_DIM)           rows [0:H)=W0ᵀ, [H:2H)=Wsxᵀ
    wh_ref,     # (2*HIDDEN, HIDDEN)           rows [0:H)=W1ᵀ, [H:2H)=Wshᵀ
    w3t_ref,    # (OUT_DIM, HIDDEN)            W3ᵀ
    bias_ref,   # (HIDDEN, 4)                  cols: b0, b1, bs, b3(padded)
    o_ref,      # (OUT_DIM, TILE_N)
):
    x = x_ref[...]                      # (IN_DIM, TILE_N) f32
    bias = bias_ref[...]                # (HIDDEN, 4)
    b0 = bias[:, 0:1]                   # (HIDDEN, 1) -> broadcast along lanes
    b1 = bias[:, 1:2]
    bs = bias[:, 2:3]
    b3 = bias[0:OUT_DIM, 3:4]           # (OUT_DIM, 1)

    # One fused MXU pass for both consumers of x: [W0ᵀ ; Wsxᵀ] @ x
    xx = jnp.dot(wx_ref[...], x, preferred_element_type=jnp.float32)  # (2H, TILE_N)
    h0_pre = xx[0:HIDDEN_DIM, :]                  # W0ᵀ x        (sublane-aligned slice)
    skip_x = xx[HIDDEN_DIM:2 * HIDDEN_DIM, :]     # Wsxᵀ x       (reused at skip layer)

    # layer 0: Linear(in, hid) + ReLU
    h = jnp.maximum(h0_pre + b0, 0.0)

    # layer 1: Linear(hid, hid) + ReLU
    wh = wh_ref[...]
    h = jnp.dot(wh[0:HIDDEN_DIM, :], h, preferred_element_type=jnp.float32) + b1
    h = jnp.maximum(h, 0.0)

    # layer 2 (skip): Linear(hid + in, hid) on concat([h, x]) + ReLU
    h = (jnp.dot(wh[HIDDEN_DIM:2 * HIDDEN_DIM, :], h,
                 preferred_element_type=jnp.float32)
         + skip_x + bs)
    h = jnp.maximum(h, 0.0)

    # layer 3 (output): Linear(hid, out) + Sigmoid  (return_rgb=True)
    y = jnp.dot(w3t_ref[...], h, preferred_element_type=jnp.float32) + b3
    o_ref[...] = jax.nn.sigmoid(y).astype(o_ref.dtype)


# ------------------------------ wrapper ---------------------------------------
def texture_field_forward(x, packed):
    """x: (N, IN_DIM) float32; packed: dict of packed/transposed weights."""
    n, in_dim = x.shape
    assert in_dim == IN_DIM and n % TILE_N == 0

    # Layout plumbing: present points on the lane axis (lane-dense slabs).
    x_t = x.T                                           # (IN_DIM, n)

    const = lambda shape: pl.BlockSpec(shape, lambda i: (0, 0))

    cost = pl.CostEstimate(
        flops=2 * n * (IN_DIM * 2 * HIDDEN_DIM
                       + 2 * HIDDEN_DIM * HIDDEN_DIM
                       + HIDDEN_DIM * OUT_DIM),
        transcendentals=n * OUT_DIM,
        bytes_accessed=4 * (n * (IN_DIM + OUT_DIM)
                            + 2 * HIDDEN_DIM * (IN_DIM + HIDDEN_DIM)
                            + OUT_DIM * HIDDEN_DIM
                            + HIDDEN_DIM * 4),
    )

    out_t = pl.pallas_call(
        texture_field_kernel,
        out_shape=jax.ShapeDtypeStruct((OUT_DIM, n), jnp.float32),
        grid_spec=pl.GridSpec(
            grid=(n // TILE_N,),
            in_specs=[
                pl.BlockSpec((IN_DIM, TILE_N), lambda i: (0, i)),
                const((2 * HIDDEN_DIM, IN_DIM)),
                const((2 * HIDDEN_DIM, HIDDEN_DIM)),
                const((OUT_DIM, HIDDEN_DIM)),
                const((HIDDEN_DIM, 4)),
            ],
            out_specs=pl.BlockSpec((OUT_DIM, TILE_N), lambda i: (0, i)),
        ),
        compiler_params=pltpu.CompilerParams(
            dimension_semantics=("parallel",)),
        cost_estimate=cost,
    )(x_t, packed["wx"], packed["wh"], packed["w3t"], packed["bias"])

    return out_t.T                                       # (n, OUT_DIM)


# ------------------------- plain-JAX reference --------------------------------
def texture_field_reference(x, params):
    h = jnp.maximum(x @ params["w0"] + params["b0"], 0.0)
    h = jnp.maximum(h @ params["w1"] + params["b1"], 0.0)
    h = jnp.maximum(h @ params["ws_h"] + x @ params["ws_x"] + params["bs"], 0.0)
    return jax.nn.sigmoid(h @ params["w3"] + params["b3"])


# ----------------------------- parameter init ---------------------------------
def init_params(key):
    ks = jax.random.split(key, 8)

    def lin(kw, kb, fan_in, fan_out):
        # kaiming-uniform-like init (matches nn.Linear bounds)
        bound = 1.0 / jnp.sqrt(fan_in)
        w = jax.random.uniform(kw, (fan_in, fan_out), jnp.float32, -bound, bound)
        b = jax.random.uniform(kb, (fan_out,), jnp.float32, -bound, bound)
        return w, b

    w0, b0 = lin(ks[0], ks[1], IN_DIM, HIDDEN_DIM)
    w1, b1 = lin(ks[2], ks[3], HIDDEN_DIM, HIDDEN_DIM)
    # skip layer: Linear(hidden + in, hidden); split weight rows into
    # [hidden part | input part] to realize concat([res, features]).
    wskip, bs = lin(ks[4], ks[5], HIDDEN_DIM + IN_DIM, HIDDEN_DIM)
    ws_h, ws_x = wskip[:HIDDEN_DIM, :], wskip[HIDDEN_DIM:, :]
    w3, b3 = lin(ks[6], ks[7], HIDDEN_DIM, OUT_DIM)

    return dict(w0=w0, b0=b0, w1=w1, b1=b1,
                ws_h=ws_h, ws_x=ws_x, bs=bs, w3=w3, b3=b3)


def pack_params(params):
    """Pack 10 operands into 4 transposed arrays for the lane-dense kernel."""
    wx = jnp.concatenate([params["w0"].T, params["ws_x"].T], axis=0)   # (2H, IN)
    wh = jnp.concatenate([params["w1"].T, params["ws_h"].T], axis=0)   # (2H, H)
    w3t = params["w3"].T                                               # (OUT, H)
    b3_pad = jnp.zeros((HIDDEN_DIM,), jnp.float32).at[:OUT_DIM].set(params["b3"])
    bias = jnp.stack([params["b0"], params["b1"], params["bs"], b3_pad],
                     axis=1)                                           # (H, 4)
    return dict(wx=wx, wh=wh, w3t=w3t, bias=bias)


if __name__ == "__main__":
    key = jax.random.PRNGKey(0)
    k_params, k_x = jax.random.split(key)
    params = init_params(k_params)
    packed = pack_params(params)

    # batch['eigenfunctions']: (N, in_dim) per-point eigenfunction features
    x = jax.random.normal(k_x, (N_POINTS, IN_DIM), jnp.float32)

    out = texture_field_forward(x, packed)
    out = jax.block_until_ready(out)

    ref = texture_field_reference(x, params)
    assert out.shape == (N_POINTS, OUT_DIM)
    assert jnp.allclose(out, ref, atol=1e-5, rtol=1e-5), "mismatch vs reference"

    # TODO(synk): 'ff'/'rff' Fourier embeddings and batchnorm variants of the
    # module are not realized here (defaults disable them).
    print("KERNEL_OK")
</pallas_src>

<mosaic_0001>
module attributes {stable_mosaic.version = 11 : i64} {
  func.func @texture_field_kernel(%arg0: i32, %arg1: memref<8x512xf32, #tpu.memory_space<vmem>>, %arg2: memref<64x8xf32, #tpu.memory_space<vmem>>, %arg3: memref<64x32xf32, #tpu.memory_space<vmem>>, %arg4: memref<3x32xf32, #tpu.memory_space<vmem>>, %arg5: memref<32x4xf32, #tpu.memory_space<vmem>>, %arg6: memref<3x512xf32, #tpu.memory_space<vmem>>) attributes {dimension_semantics = [#tpu.dimension_semantics<parallel>], iteration_bounds = array<i64: 2>, scalar_prefetch = 0 : i64, scratch_operands = 0 : i64, tpu.core_type = #tpu.core_type<tc>, window_params = [{transform_indices = @transform_0, window_bounds = array<i64: 8, 512>}, {pipeline_mode = #tpu.pipeline_mode<synchronous>, transform_indices = @transform_1, window_bounds = array<i64: 64, 8>}, {pipeline_mode = #tpu.pipeline_mode<synchronous>, transform_indices = @transform_2, window_bounds = array<i64: 64, 32>}, {pipeline_mode = #tpu.pipeline_mode<synchronous>, transform_indices = @transform_3, window_bounds = array<i64: 3, 32>}, {pipeline_mode = #tpu.pipeline_mode<synchronous>, transform_indices = @transform_4, window_bounds = array<i64: 32, 4>}, {transform_indices = @transform_5, window_bounds = array<i64: 3, 512>}]} {
    %c0 = arith.constant 0 : index
    %c0_0 = arith.constant 0 : index
    %0 = vector.load %arg1[%c0, %c0_0] : memref<8x512xf32, #tpu.memory_space<vmem>>, vector<8x512xf32>
    %c0_1 = arith.constant 0 : index
    %c0_2 = arith.constant 0 : index
    %1 = vector.load %arg5[%c0_1, %c0_2] : memref<32x4xf32, #tpu.memory_space<vmem>>, vector<32x4xf32>
    %2 = vector.extract_strided_slice %1 {offsets = [0, 0], sizes = [32, 1], strides = [1, 1]} : vector<32x4xf32> to vector<32x1xf32>
    %3 = vector.extract_strided_slice %1 {offsets = [0, 1], sizes = [32, 1], strides = [1, 1]} : vector<32x4xf32> to vector<32x1xf32>
    %4 = vector.extract_strided_slice %1 {offsets = [0, 2], sizes = [32, 1], strides = [1, 1]} : vector<32x4xf32> to vector<32x1xf32>
    %5 = vector.extract_strided_slice %1 {offsets = [0, 3], sizes = [3, 1], strides = [1, 1]} : vector<32x4xf32> to vector<3x1xf32>
    %c0_3 = arith.constant 0 : index
    %c0_4 = arith.constant 0 : index
    %6 = vector.load %arg2[%c0_3, %c0_4] : memref<64x8xf32, #tpu.memory_space<vmem>>, vector<64x8xf32>
    %cst = arith.constant dense<0.000000e+00> : vector<64x512xf32>
    %7 = tpu.matmul %6, %0, %cst {dimension_numbers = #tpu.dot_dimension_numbers<[1], [0], [0], [1], [0, 0, 1, 1], [], []>} : vector<64x8xf32>, vector<8x512xf32>, vector<64x512xf32> -> vector<64x512xf32>
    %8 = vector.extract_strided_slice %7 {offsets = [0, 0], sizes = [32, 512], strides = [1, 1]} : vector<64x512xf32> to vector<32x512xf32>
    %9 = vector.extract_strided_slice %7 {offsets = [32, 0], sizes = [32, 512], strides = [1, 1]} : vector<64x512xf32> to vector<32x512xf32>
    %10 = vector.broadcast %2 : vector<32x1xf32> to vector<32x512xf32>
    %11 = arith.addf %8, %10 : vector<32x512xf32>
    %cst_5 = arith.constant 0.000000e+00 : f32
    %12 = vector.broadcast %cst_5 : f32 to vector<32x512xf32>
    %13 = arith.maximumf %11, %12 : vector<32x512xf32>
    %c0_6 = arith.constant 0 : index
    %c0_7 = arith.constant 0 : index
    %14 = vector.load %arg3[%c0_6, %c0_7] : memref<64x32xf32, #tpu.memory_space<vmem>>, vector<64x32xf32>
    %15 = vector.extract_strided_slice %14 {offsets = [0, 0], sizes = [32, 32], strides = [1, 1]} : vector<64x32xf32> to vector<32x32xf32>
    %cst_8 = arith.constant dense<0.000000e+00> : vector<32x512xf32>
    %16 = tpu.matmul %15, %13, %cst_8 {dimension_numbers = #tpu.dot_dimension_numbers<[1], [0], [0], [1], [0, 0, 1, 1], [], []>} : vector<32x32xf32>, vector<32x512xf32>, vector<32x512xf32> -> vector<32x512xf32>
    %17 = vector.broadcast %3 : vector<32x1xf32> to vector<32x512xf32>
    %18 = arith.addf %16, %17 : vector<32x512xf32>
    %cst_9 = arith.constant 0.000000e+00 : f32
    %19 = vector.broadcast %cst_9 : f32 to vector<32x512xf32>
    %20 = arith.maximumf %18, %19 : vector<32x512xf32>
    %21 = vector.extract_strided_slice %14 {offsets = [32, 0], sizes = [32, 32], strides = [1, 1]} : vector<64x32xf32> to vector<32x32xf32>
    %cst_10 = arith.constant dense<0.000000e+00> : vector<32x512xf32>
    %22 = tpu.matmul %21, %20, %cst_10 {dimension_numbers = #tpu.dot_dimension_numbers<[1], [0], [0], [1], [0, 0, 1, 1], [], []>} : vector<32x32xf32>, vector<32x512xf32>, vector<32x512xf32> -> vector<32x512xf32>
    %23 = arith.addf %22, %9 : vector<32x512xf32>
    %24 = vector.broadcast %4 : vector<32x1xf32> to vector<32x512xf32>
    %25 = arith.addf %23, %24 : vector<32x512xf32>
    %cst_11 = arith.constant 0.000000e+00 : f32
    %26 = vector.broadcast %cst_11 : f32 to vector<32x512xf32>
    %27 = arith.maximumf %25, %26 : vector<32x512xf32>
    %c0_12 = arith.constant 0 : index
    %c0_13 = arith.constant 0 : index
    %28 = vector.load %arg4[%c0_12, %c0_13] : memref<3x32xf32, #tpu.memory_space<vmem>>, vector<3x32xf32>
    %cst_14 = arith.constant dense<0.000000e+00> : vector<3x512xf32>
    %29 = tpu.matmul %28, %27, %cst_14 {dimension_numbers = #tpu.dot_dimension_numbers<[1], [0], [0], [1], [0, 0, 1, 1], [], []>} : vector<3x32xf32>, vector<32x512xf32>, vector<3x512xf32> -> vector<3x512xf32>
    %30 = vector.broadcast %5 : vector<3x1xf32> to vector<3x512xf32>
    %31 = arith.addf %29, %30 : vector<3x512xf32>
    %32 = arith.negf %31 : vector<3x512xf32>
    %33 = math.exp %32 : vector<3x512xf32>
    %cst_15 = arith.constant 1.000000e+00 : f32
    %34 = vector.broadcast %cst_15 : f32 to vector<3x512xf32>
    %35 = arith.addf %34, %33 : vector<3x512xf32>
    %36 = arith.divf %34, %35 : vector<3x512xf32>
    %c0_16 = arith.constant 0 : index
    %c0_17 = arith.constant 0 : index
    %37 = vector.load %arg6[%c0_16, %c0_17] : memref<3x512xf32, #tpu.memory_space<vmem>>, vector<3x512xf32>
    tpu.vector_store %arg6[%c0_16, %c0_17], %36 {strides = array<i32>} : memref<3x512xf32, #tpu.memory_space<vmem>>, vector<3x512xf32>,
    return
  }
  func.func @transform_0(%arg0: i32) -> (i32, i32) {
    %c0_i32 = arith.constant 0 : i32
    %c0_i32_0 = arith.constant 0 : i32
    return %c0_i32, %arg0 : i32, i32
  }
  func.func @transform_1(%arg0: i32) -> (i32, i32) {
    %c0_i32 = arith.constant 0 : i32
    %c0_i32_0 = arith.constant 0 : i32
    %c0_i32_1 = arith.constant 0 : i32
    return %c0_i32, %c0_i32_0 : i32, i32
  }
  func.func @transform_2(%arg0: i32) -> (i32, i32) {
    %c0_i32 = arith.constant 0 : i32
    %c0_i32_0 = arith.constant 0 : i32
    %c0_i32_1 = arith.constant 0 : i32
    return %c0_i32, %c0_i32_0 : i32, i32
  }
  func.func @transform_3(%arg0: i32) -> (i32, i32) {
    %c0_i32 = arith.constant 0 : i32
    %c0_i32_0 = arith.constant 0 : i32
    %c0_i32_1 = arith.constant 0 : i32
    return %c0_i32, %c0_i32_0 : i32, i32
  }
  func.func @transform_4(%arg0: i32) -> (i32, i32) {
    %c0_i32 = arith.constant 0 : i32
    %c0_i32_0 = arith.constant 0 : i32
    %c0_i32_1 = arith.constant 0 : i32
    return %c0_i32, %c0_i32_0 : i32, i32
  }
  func.func @transform_5(%arg0: i32) -> (i32, i32) {
    %c0_i32 = arith.constant 0 : i32
    %c0_i32_0 = arith.constant 0 : i32
    return %c0_i32, %arg0 : i32, i32
  }
}

</mosaic_0001>

<bundles_post_ra>
// kernel: tpu_custom_call.1
= control target key start
LH: loop header
LB: loop body
LE: loop exit
PB: predicated region body
PF: predicated region fallthrough
CT: control target
= control target key end

     0   :  { %10 = vsyncpa [#allocation3], 0  ;;  %s1805_s0 = inlined_call_operand.vmem [shape: f32[8,1024], index: 0, kind: input, shape index: {}]   ;;  %s1806_s1 = inlined_call_operand.vmem [shape: f32[64,8], index: 1, kind: input, shape index: {}]   ;;  %s1807_s2 = inlined_call_operand.vmem [shape: f32[64,32], index: 2, kind: input, shape index: {}]   ;;  %s1808_s3 = inlined_call_operand.vmem [shape: f32[3,32], index: 3, kind: input, shape index: {}]   ;;  %s1809_s4 = inlined_call_operand.vmem [shape: f32[32,4], index: 4, kind: input, shape index: {}]   ;;  %s1810_s5 = inlined_call_operand.hbm [shape: f32[3,1024], index: 5, kind: output, shape index: {}]  }
   0x1   :  { %12 = vsyncpa [#allocation3 + $0x1], 0  ;;  %s1554_s18 = smov 0   ;;  %s1556_s19 = smov 0  }
   0x2   :  { %s1558_s20 = smov 0   ;;  %s1560_s21 = smov 0  }
   0x3 LB: > { %s1575_s22 = sadd.s32 4294967295, %s1516_s21   ;;  %s1272_s23 = sadd.s32 4294967294, %s1516_s21   ;;  %s1516_s21 = sphi %s1560_s21, %s1816_s21   ;;  %s1512_s20 = sphi %s1558_s20, %s1815_s20   ;;  %s1508_s19 = sphi %s1556_s19, %s1814_s19   ;;  %s1504_s18 = sphi %s1554_s18, %s1813_s18  }
   0x4   : > { %s1579_s24 = sadd.s32 1, %s1516_s21   ;;  %s135_s25 = sadd.s32 1, %s1512_s20 }
   0x5   : > { %s132_s26 = ssub.s32 %s1516_s21, %s1579_s24  ;;  %p145_p0 = scmp.ne.s32.totalorder %s1512_s20, %s1508_s19 }
   0x6   : > { %p133_p1 = scmp.eq.s32.totalorder %s132_s26, 0  ;;  %p146_p2 = scmp.eq.s32.totalorder %s1575_s22, 1 }
   0x7   : > { %p151_p3 = scmp.ne.s32.totalorder %s1508_s19, %s1504_s18  ;;  %p152_p4 = scmp.eq.s32.totalorder %s1272_s23, 1 }
   0x8   : > { %s1590_s27 = scalar_select %p133_p1, %s1512_s20, %s135_s25  }
   0x9   : > { %p1592_p5 = por %p146_p2, %p145_p0  ;;  %p1596_p6 = por %p152_p4, %p151_p3 }
   0xa   : > { %p1275_p7 = scmp.ge.s32.totalorder %s1516_s21, 1  ;;  %p191_p8 = scmp.lt.s32.totalorder %s1516_s21, 3 }
   0xc   : > { %p192_p9 = pnand %p1275_p7, %p191_p8 }
   0xd   : > { %s1277_s30 = sshll.u32 (!%p192_p9), %s1575_s22, 2  ;;  %v1518_v0 = vmov (!%p192_p9), 0.0   ;;  %v1608_v1 = vld [vmem:[%s1809_s4] sm:$0xff] (!%p192_p9)  ;;  %v1519_v2 = vmov (!%p192_p9), 0   ;;  %v1613_v3 = vld [vmem:[%s1809_s4 + $0x10] sm:$0xff] (!%p192_p9)  ;;  %v1620_v4 = vld [vmem:[%s1809_s4 + $0x8] sm:$0xff] (!%p192_p9) }
   0xe   : > { %195 = sbr.rel (%p192_p9) target bundleno = 991 (0x3df), region = 40  ;;  %p220_p10 = scmp.lt.s32.totalorder (!%p192_p9), %s1277_s30, 7  ;;  %331 = vmatprep.mubr.f32.mxu0 (!%p192_p9), %v1518_v0  ;;  %444 = vmatprep.mubr.f32.mxu1 (!%p192_p9), %v1518_v0  ;;  %v1625_v5 = vld [vmem:[%s1809_s4 + $0x18] sm:$0xff] (!%p192_p9)  ;;  %v234_v6 = vld [vmem:[%s1806_s1] sm:$0xff] (!%p192_p9)  ;;  %vm242_vm0 = vcmask (!%p192_p9), 64512   ;;  %v235_v11 = vld [vmem:[%s1806_s1 + $0x8] sm:$0xff] (!%p192_p9) }
   0xf   : > { %1431 = vset.pattern.permute.xlu0 (!%p192_p9), %v1519_v2  ;;  %1432 = vset.pattern.permute.xlu1 (!%p192_p9), %v1519_v2  ;;  %v236_v12 = vld [vmem:[%s1806_s1 + $0x10] sm:$0xff] (!%p192_p9)  ;;  %v237_v13 = vld [vmem:[%s1806_s1 + $0x18] sm:$0xff] (!%p192_p9)  ;;  %v238_v14 = vld [vmem:[%s1806_s1 + $0x20] sm:$0xff] (!%p192_p9)  ;;  %v1520_v18 = vmov (!%p192_p9), 1   ;;  %vm569_vm1 = vcmask (!%p192_p9), 261120   ;;  %s216_s26 = sand.u32 (!%p192_p9), 1, %s1508_s19  }
  0x10   : > { %495 = vperm.xlu0 (!%p192_p9), %1431, %v1608_v1   ;;  %505 = vperm.xlu1 (!%p192_p9), %1432, %v1613_v3   ;;  %v239_v15 = vld [vmem:[%s1806_s1 + $0x28] sm:$0xff] (!%p192_p9)  ;;  %v240_v16 = vld [vmem:[%s1806_s1 + $0x30] sm:$0xff] (!%p192_p9)  ;;  %v241_v17 = vld [vmem:[%s1806_s1 + $0x38] sm:$0xff] (!%p192_p9)  ;;  %s1322_s6 = sshll.u32 (!%p192_p9), %s1575_s22, 8  ;;  %s1199_s12 = scalar_lea.sflag (!%p192_p9), [#allocation3], %s216_s26 }
  0x11   : > { %s1763_s11 = scalar_lea.hbm (!%p192_p9), %s1810_s5, %s1322_s6  ;;  %s1523_s13 = smov (!%p192_p9), [#allocation2]  }
  0x14   : > { %500 = vperm.xlu0 (!%p192_p9), %1431, %v1620_v4   ;;  %510 = vperm.xlu1 (!%p192_p9), %1432, %v1625_v5  }
  0x15   : > { %s1818_s30 = smov (!%p220_p10, %s1277_s30), 7 }
  0x16   : > { %s1278_s14 = sshll.u32 %s1818_s30, 3  ;;  %s1276_s30 = sshll.u32 %s216_s26, 4 }
  0x17   : > { %s223_s17 = scalar_lea.vmem %s1805_s0, %s1278_s14  ;;  %s218_s7 = scalar_lea.vmem [#allocation2], %s1276_s30 }
  0x18   : > { %v227_v7 = vld [vmem:[%s223_s17 + $0x8] sm:$0xff]  ;;  %v229_v8 = vld [vmem:[%s223_s17 + $0x18] sm:$0xff]  ;;  %v226_v9 = vld [vmem:[%s223_s17] sm:$0xff]  ;;  %1434 = vset.pattern.permute.xlu1 %v1520_v18  ;;  %1433 = vset.pattern.permute.xlu0 %v1520_v18  ;;  %s1213_s8 = sshll.u32 %s218_s7, 4  ;;  %s1458_s14 = sshll.u32 %s1523_s13, 4  ;;  %s1765_s8 = int_to_ptr.vmem [resolvable:$true] %s1213_s8  ;;  %s1459_s14 = int_to_ptr.vmem [resolvable:$false] %s1458_s14 }
  0x19   : > { %267 = vmatprep.subr.mxu0 %v227_v7  ;;  %380 = vmatprep.subr.mxu1 %v229_v8  ;;  %v228_v10 = vld [vmem:[%s223_s17 + $0x10] sm:$0xff]  ;;  %s1454_s22 = scalar_lea.vmem %s1765_s8, 256  ;;  %s1460_s15 = scalar_lea.vmem %s1459_s14, 512 }
  0x1a   : > { %268 = vmatpush1.msra.mxu0 %v226_v9  ;;  %381 = vmatpush1.msra.mxu1 %v228_v10  ;;  %p1455_p11 = scmp.ne.s32.totalorder %s1765_s8, %s1454_s22  ;;  %p1461_p0 = scmp.lt.s32.totalorder %s1765_s8, %s1459_s14 }
  0x1b   : > { %1279 = vmatmul.mubr.msk.f32.vlgmr.msra.gmra.mrb[0].mxu0 %vm242_vm0, %v234_v6  ;;  %1287 = vmatmul.mubr.msk.f32.vlgmr.msra.gmra.mrb[0].mxu1 %vm242_vm0, %v234_v6  ;;  %p1462_p1 = scmp.lt.s32.totalorder %s1460_s15, %s1454_s22 }
  0x1c   : > { %337 = vmatprep.mubr.f32.mxu0 %v1518_v0  ;;  %450 = vmatprep.mubr.f32.mxu1 %v1518_v0  ;;  %p1456_p12 = pnand %p1455_p11, %p1592_p5 }
  0x1d   : > { %558 = vperm.xlu1 %1434, %v1620_v4   ;;  %554 = vperm.xlu0 %1433, %v1608_v1   ;;  %p1463_p2 = por %p1462_p1, %p1461_p0 }
  0x1e   : > { %p1457_p13 = pneg %p1456_p12 }
  0x1f   : > { %1280 = vmatmul.mubr.msk.f32.gmra.mrb[2].mxu0 %vm242_vm0, %v235_v11  ;;  %1288 = vmatmul.mubr.msk.f32.gmra.mrb[2].mxu1 %vm242_vm0, %v235_v11 }
  0x20   : > { %343 = vmatprep.mubr.f32.mxu0 %v1518_v0  ;;  %456 = vmatprep.mubr.f32.mxu1 %v1518_v0  ;;  %p1464_p3 = pnand %p1463_p2, %p1457_p13 }
  0x21   : > { %562 = vperm.xlu1 %1434, %v1613_v3   ;;  %566 = vperm.xlu0 %1433, %v1625_v5  }
  0x23   : > { %1281 = vmatmul.mubr.msk.f32.gmra.mrb[4].mxu0 %vm242_vm0, %v236_v12  ;;  %1289 = vmatmul.mubr.msk.f32.gmra.mrb[4].mxu1 %vm242_vm0, %v236_v12 }
  0x24   : > { %349 = vmatprep.mubr.f32.mxu0 %v1518_v0  ;;  %462 = vmatprep.mubr.f32.mxu1 %v1518_v0 }
  0x27   : > { %1282 = vmatmul.mubr.msk.f32.gmra.mrb[6].mxu0 %vm242_vm0, %v237_v13  ;;  %1290 = vmatmul.mubr.msk.f32.gmra.mrb[6].mxu1 %vm242_vm0, %v237_v13 }
  0x28   : > { %355 = vmatprep.mubr.f32.mxu0 %v1518_v0  ;;  %468 = vmatprep.mubr.f32.mxu1 %v1518_v0 }
  0x2b   : > { %1283 = vmatmul.mubr.msk.f32.gmra.mrb[8].mxu0 %vm242_vm0, %v238_v14  ;;  %1291 = vmatmul.mubr.msk.f32.gmra.mrb[8].mxu1 %vm242_vm0, %v238_v14 }
  0x2c   : > { %361 = vmatprep.mubr.f32.mxu0 %v1518_v0  ;;  %474 = vmatprep.mubr.f32.mxu1 %v1518_v0 }
  0x2f   : > { %1284 = vmatmul.mubr.msk.f32.gmra.mrb[10].mxu0 %vm242_vm0, %v239_v15  ;;  %1292 = vmatmul.mubr.msk.f32.gmra.mrb[10].mxu1 %vm242_vm0, %v239_v15 }
  0x30   : > { %367 = vmatprep.mubr.f32.mxu0 %v1518_v0  ;;  %480 = vmatprep.mubr.f32.mxu1 %v1518_v0 }
  0x33   : > { %1285 = vmatmul.mubr.msk.f32.gmra.mrb[12].mxu0 %vm242_vm0, %v240_v16  ;;  %1293 = vmatmul.mubr.msk.f32.gmra.mrb[12].mxu1 %vm242_vm0, %v240_v16 }
  0x34   : > { %373 = vmatprep.mubr.f32.mxu0 %v1518_v0  ;;  %486 = vmatprep.mubr.f32.mxu1 %v1518_v0 }
  0x37   : > { %1286 = vmatmul.mubr.msk.f32.gmra.mrb[14].mxu0 %vm242_vm0, %v241_v17  ;;  %1294 = vmatmul.mubr.msk.f32.gmra.mrb[14].mxu1 %vm242_vm0, %v241_v17 }
  0x38   : > { %646 = vmatprep.mubr.f32.mxu0 %v1518_v0  ;;  %735 = vmatprep.mubr.f32.mxu1 %v1518_v0 }
  0x8f   : > { %v496_v19 = vpop.permute.xlu0 %495  ;;  %v506_v27 = vpop.permute.xlu1 %505 }
  0x93   : > { %v501_v24 = vpop.permute.xlu0 %500  ;;  %v511_v56 = vpop.permute.xlu1 %510 }
  0xee   : > { %v333_v20 = vpop.f32.mrb[0].mxu0  ;;  %v446_v21 = vpop.f32.mrb[0].mxu1 }
  0xef   : > { %v335_v22 = vpop.f32.mrb[1].mxu0  ;;  %v448_v23 = vpop.f32.mrb[1].mxu1  ;;  %v513_v25 = vadd.f32 %v496_v19, %v333_v20  ;;  %v515_v26 = vadd.f32 %v496_v19, %v446_v21  ;;  %v545_v20 = vld [vmem:[%s1807_s2] sm:$0xff]  ;;  %v546_v21 = vld [vmem:[%s1807_s2 + $0x8] sm:$0xff] }
  0xf0   : > { %v514_v28 = vadd.f32 %v496_v19, %v335_v22  ;;  %v516_v29 = vadd.f32 %v496_v19, %v448_v23  ;;  %v547_v22 = vld [vmem:[%s1807_s2 + $0x10] sm:$0xff]  ;;  %v548_v23 = vld [vmem:[%s1807_s2 + $0x18] sm:$0xff] }
  0xf1   : > { %v529_v38 = vmax.f32 %v513_v25, 0.0  ;;  %v531_v39 = vmax.f32 %v515_v26, 0.0  ;;  %v559_v25 = vpop.permute.xlu1 %558  ;;  %v555_v26 = vpop.permute.xlu0 %554 }
  0xf2   : > { %v339_v30 = vpop.f32.mrb[2].mxu0  ;;  %v452_v31 = vpop.f32.mrb[2].mxu1  ;;  %v530_v42 = vmax.f32 %v514_v28, 0.0  ;;  %v532_v43 = vmax.f32 %v516_v29, 0.0 }
  0xf3   : > { %v517_v32 = vadd.f32 %v501_v24, %v339_v30  ;;  %v519_v33 = vadd.f32 %v501_v24, %v452_v31  ;;  %v341_v34 = vpop.f32.mrb[3].mxu0  ;;  %v454_v35 = vpop.f32.mrb[3].mxu1 }
  0xf4   : > { %v518_v36 = vadd.f32 %v501_v24, %v341_v34  ;;  %v520_v37 = vadd.f32 %v501_v24, %v454_v35  ;;  %v1521_v24 = vmov 2  }
  0xf5   : > { %v533_v40 = vmax.f32 %v517_v32, 0.0  ;;  %v535_v41 = vmax.f32 %v519_v33, 0.0  ;;  %1435 = vset.pattern.permute.xlu1 %v1521_v24  ;;  %1436 = vset.pattern.permute.xlu0 %v1521_v24  ;;  %v550_v24 = vld [vmem:[%s1807_s2 + $0x28] sm:$0xff] }
  0xf6   : > { %v534_v44 = vmax.f32 %v518_v36, 0.0  ;;  %v536_v45 = vmax.f32 %v520_v37, 0.0  ;;  %v345_v46 = vpop.f32.mrb[4].mxu0  ;;  %v458_v47 = vpop.f32.mrb[4].mxu1  ;;  %967 = vperm.xlu1 %1435, %v1608_v1   ;;  %971 = vperm.xlu0 %1436, %v1620_v4  }
  0xf7   : > { %v1325_v48 = vpack.c.bf16 %v533_v40, %v529_v38  ;;  %v1333_v49 = vpack.c.bf16 %v535_v41, %v531_v39  ;;  %v347_v50 = vpop.f32.mrb[5].mxu0  ;;  %v460_v51 = vpop.f32.mrb[5].mxu1  ;;  %v521_v54 = vadd.f32 %v506_v27, %v345_v46  ;;  %v523_v55 = vadd.f32 %v506_v27, %v458_v47 }
  0xf8   : > { %v1323_v52 = vpack.c.bf16 %v534_v44, %v530_v42  ;;  %v1331_v53 = vpack.c.bf16 %v536_v45, %v532_v43  ;;  %v522_v57 = vadd.f32 %v506_v27, %v347_v50  ;;  %v524_v58 = vadd.f32 %v506_v27, %v460_v51  ;;  %v563_v44 = vpop.permute.xlu1 %562 }
  0xf9   : > { %v537_v8 = vmax.f32 %v521_v54, 0.0  ;;  %v539_v9 = vmax.f32 %v523_v55, 0.0 }
  0xfa   : > { %v351_v59 = vpop.f32.mrb[6].mxu0  ;;  %v464_v60 = vpop.f32.mrb[6].mxu1  ;;  %1324 = vmatprep.subr.bf16.mxu0 %v1323_v52  ;;  %1332 = vmatprep.subr.bf16.mxu1 %v1331_v53  ;;  %v538_v12 = vmax.f32 %v522_v57, 0.0  ;;  %v540_v13 = vmax.f32 %v524_v58, 0.0 }
  0xfb   : > { %v525_v61 = vadd.f32 %v511_v56, %v351_v59  ;;  %v527_v62 = vadd.f32 %v511_v56, %v464_v60  ;;  %v353_v63 = vpop.f32.mrb[7].mxu0  ;;  %v466_v2 = vpop.f32.mrb[7].mxu1  ;;  %1326 = vmatpush1.bf16.msra.mxu0 %v1325_v48  ;;  %1334 = vmatpush1.bf16.msra.mxu1 %v1333_v49 }
  0xfc   : > { %v526_v6 = vadd.f32 %v511_v56, %v353_v63  ;;  %v528_v7 = vadd.f32 %v511_v56, %v466_v2  ;;  %975 = vperm.xlu1 %1435, %v1613_v3   ;;  %v567_v59 = vpop.permute.xlu0 %566 }
  0xfd   : > { %v541_v10 = vmax.f32 %v525_v61, 0.0  ;;  %v543_v11 = vmax.f32 %v527_v62, 0.0 }
  0xfe   : > { %v542_v14 = vmax.f32 %v526_v6, 0.0  ;;  %v544_v15 = vmax.f32 %v528_v7, 0.0 }
  0xff   : > { %v1329_v16 = vpack.c.bf16 %v541_v10, %v537_v8  ;;  %v1337_v17 = vpack.c.bf16 %v543_v11, %v539_v9 }
 0x100   : > { %v1327_v18 = vpack.c.bf16 %v542_v14, %v538_v12  ;;  %v1335_v19 = vpack.c.bf16 %v544_v15, %v540_v13  ;;  %979 = vperm.xlu1 %1435, %v1625_v5  }
 0x102   : > { %1328 = vmatprep.subr.bf16.mxu0 %v1327_v18  ;;  %1336 = vmatprep.subr.bf16.mxu1 %v1335_v19 }
 0x103   : > { %1330 = vmatpush1.bf16.msra.mxu0 %v1329_v16  ;;  %1338 = vmatpush1.bf16.msra.mxu1 %v1337_v17 }
 0x106   : > { %1295 = vmatmul.mubr.msk.f32.vlgmr.msra.gmra.mrb[16].mxu0 %vm569_vm1, %v545_v20  ;;  %1299 = vmatmul.mubr.msk.f32.vlgmr.msra.gmra.mrb[16].mxu1 %vm569_vm1, %v545_v20 }
 0x107   : > { %652 = vmatprep.mubr.f32.mxu0 %v1518_v0  ;;  %741 = vmatprep.mubr.f32.mxu1 %v1518_v0 }
 0x10a   : > { %1296 = vmatmul.mubr.msk.f32.gmra.mrb[18].mxu0 %vm569_vm1, %v546_v21  ;;  %1300 = vmatmul.mubr.msk.f32.gmra.mrb[18].mxu1 %vm569_vm1, %v546_v21 }
 0x10b   : > { %658 = vmatprep.mubr.f32.mxu0 %v1518_v0  ;;  %747 = vmatprep.mubr.f32.mxu1 %v1518_v0 }
 0x10e   : > { %1297 = vmatmul.mubr.msk.f32.gmra.mrb[20].mxu0 %vm569_vm1, %v547_v22  ;;  %1301 = vmatmul.mubr.msk.f32.gmra.mrb[20].mxu1 %vm569_vm1, %v547_v22 }
 0x10f   : > { %664 = vmatprep.mubr.f32.mxu0 %v1518_v0  ;;  %753 = vmatprep.mubr.f32.mxu1 %v1518_v0 }
 0x112   : > { %1298 = vmatmul.mubr.msk.f32.gmra.mrb[22].mxu0 %vm569_vm1, %v548_v23  ;;  %1302 = vmatmul.mubr.msk.f32.gmra.mrb[22].mxu1 %vm569_vm1, %v548_v23  ;;  %v549_v23 = vld [vmem:[%s1807_s2 + $0x20] sm:$0xff] }
 0x113   : > { %852 = vmatprep.mubr.f32.mxu0 %v1518_v0  ;;  %941 = vmatprep.mubr.f32.mxu1 %v1518_v0 }
 0x1d9   : > { %v648_v27 = vpop.f32.mrb[16].mxu0  ;;  %v737_v28 = vpop.f32.mrb[16].mxu1 }
 0x1da   : > { %v650_v29 = vpop.f32.mrb[17].mxu0  ;;  %v739_v30 = vpop.f32.mrb[17].mxu1  ;;  %v649_v31 = vadd.f32 %v648_v27, %v555_v26  ;;  %v738_v32 = vadd.f32 %v737_v28, %v555_v26  ;;  %v1522_v27 = vmov 3  }
 0x1db   : > { %v651_v35 = vadd.f32 %v650_v29, %v555_v26  ;;  %v740_v36 = vadd.f32 %v739_v30, %v555_v26  ;;  %v552_v26 = vld [vmem:[%s1807_s2 + $0x38] sm:$0xff]  ;;  %1437 = vset.pattern.permute.xlu0 %v1522_v27  ;;  %v968_v28 = vpop.permute.xlu1 %967 }
 0x1dc   : > { %v760_v42 = vmax.f32 %v649_v31, 0.0  ;;  %v762_v43 = vmax.f32 %v738_v32, 0.0  ;;  %1016 = vperm.xlu0 %1437, %v1608_v1  }
 0x1dd   : > { %v654_v33 = vpop.f32.mrb[18].mxu0  ;;  %v743_v34 = vpop.f32.mrb[18].mxu1  ;;  %v761_v45 = vmax.f32 %v651_v35, 0.0  ;;  %v763_v47 = vmax.f32 %v740_v36, 0.0 }
 0x1de   : > { %v655_v37 = vadd.f32 %v654_v33, %v559_v25  ;;  %v744_v38 = vadd.f32 %v743_v34, %v559_v25  ;;  %v656_v39 = vpop.f32.mrb[19].mxu0  ;;  %v745_v4 = vpop.f32.mrb[19].mxu1 }
 0x1df   : > { %v657_v40 = vadd.f32 %v656_v39, %v559_v25  ;;  %v746_v3 = vadd.f32 %v745_v4, %v559_v25  ;;  %v551_v25 = vld [vmem:[%s1807_s2 + $0x30] sm:$0xff]  ;;  %v972_v33 = vpop.permute.xlu0 %971  ;;  %v976_v36 = vpop.permute.xlu1 %975 }
 0x1e0   : > { %v764_v41 = vmax.f32 %v655_v37, 0.0  ;;  %v766_v5 = vmax.f32 %v744_v38, 0.0 }
 0x1e1   : > { %v765_v46 = vmax.f32 %v657_v40, 0.0  ;;  %v767_v48 = vmax.f32 %v746_v3, 0.0  ;;  %v660_v49 = vpop.f32.mrb[20].mxu0  ;;  %v749_v50 = vpop.f32.mrb[20].mxu1 }
 0x1e2   : > { %v662_v51 = vpop.f32.mrb[21].mxu0  ;;  %v751_v52 = vpop.f32.mrb[21].mxu1  ;;  %v1341_v53 = vpack.c.bf16 %v764_v41, %v760_v42  ;;  %v1349_v54 = vpack.c.bf16 %v766_v5, %v762_v43  ;;  %v661_v57 = vadd.f32 %v660_v49, %v563_v44  ;;  %v750_v58 = vadd.f32 %v749_v50, %v563_v44 }
 0x1e3   : > { %v1339_v55 = vpack.c.bf16 %v765_v46, %v761_v45  ;;  %v1347_v56 = vpack.c.bf16 %v767_v48, %v763_v47  ;;  %v663_v62 = vadd.f32 %v662_v51, %v563_v44  ;;  %v752_v63 = vadd.f32 %v751_v52, %v563_v44 }
 0x1e4   : > { %v768_v11 = vmax.f32 %v661_v57, 0.0  ;;  %v770_v12 = vmax.f32 %v750_v58, 0.0 }
 0x1e5   : > { %v666_v60 = vpop.f32.mrb[22].mxu0  ;;  %v755_v61 = vpop.f32.mrb[22].mxu1  ;;  %1340 = vmatprep.subr.bf16.mxu0 %v1339_v55  ;;  %1348 = vmatprep.subr.bf16.mxu1 %v1347_v56  ;;  %v769_v15 = vmax.f32 %v663_v62, 0.0  ;;  %v771_v17 = vmax.f32 %v752_v63, 0.0 }
 0x1e6   : > { %v667_v2 = vadd.f32 %v666_v60, %v567_v59  ;;  %v756_v6 = vadd.f32 %v755_v61, %v567_v59  ;;  %v668_v7 = vpop.f32.mrb[23].mxu0  ;;  %v757_v8 = vpop.f32.mrb[23].mxu1  ;;  %1342 = vmatpush1.bf16.msra.mxu0 %v1341_v53  ;;  %1350 = vmatpush1.bf16.msra.mxu1 %v1349_v54 }
 0x1e7   : > { %v669_v9 = vadd.f32 %v668_v7, %v567_v59  ;;  %v758_v10 = vadd.f32 %v757_v8, %v567_v59  ;;  %v980_v60 = vpop.permute.xlu1 %979 }
 0x1e8   : > { %v772_v13 = vmax.f32 %v667_v2, 0.0  ;;  %v774_v14 = vmax.f32 %v756_v6, 0.0 }
 0x1e9   : > { %v773_v16 = vmax.f32 %v669_v9, 0.0  ;;  %v775_v18 = vmax.f32 %v758_v10, 0.0 }
 0x1ea   : > { %v1345_v19 = vpack.c.bf16 %v772_v13, %v768_v11  ;;  %v1353_v20 = vpack.c.bf16 %v774_v14, %v770_v12 }
 0x1eb   : > { %v1343_v21 = vpack.c.bf16 %v773_v16, %v769_v15  ;;  %v1351_v22 = vpack.c.bf16 %v775_v18, %v771_v17 }
 0x1ed   : > { %1344 = vmatprep.subr.bf16.mxu0 %v1343_v21  ;;  %1352 = vmatprep.subr.bf16.mxu1 %v1351_v22 }
 0x1ee   : > { %1346 = vmatpush1.bf16.msra.mxu0 %v1345_v19  ;;  %1354 = vmatpush1.bf16.msra.mxu1 %v1353_v20 }
 0x1f1   : > { %1303 = vmatmul.mubr.msk.f32.vlgmr.msra.gmra.mrb[8].mxu0 %vm569_vm1, %v549_v23  ;;  %1307 = vmatmul.mubr.msk.f32.vlgmr.msra.gmra.mrb[8].mxu1 %vm569_vm1, %v549_v23 }
 0x1f2   : > { %858 = vmatprep.mubr.f32.mxu0 %v1518_v0  ;;  %947 = vmatprep.mubr.f32.mxu1 %v1518_v0 }
 0x1f5   : > { %1304 = vmatmul.mubr.msk.f32.gmra.mrb[10].mxu0 %vm569_vm1, %v550_v24  ;;  %1308 = vmatmul.mubr.msk.f32.gmra.mrb[10].mxu1 %vm569_vm1, %v550_v24  ;;  %v1014_v24 = vld [vmem:[%s1808_s3] sm:$0x7] }
 0x1f6   : > { %864 = vmatprep.mubr.f32.mxu0 %v1518_v0  ;;  %953 = vmatprep.mubr.f32.mxu1 %v1518_v0 }
 0x1f9   : > { %1305 = vmatmul.mubr.msk.f32.gmra.mrb[12].mxu0 %vm569_vm1, %v551_v25  ;;  %1309 = vmatmul.mubr.msk.f32.gmra.mrb[12].mxu1 %vm569_vm1, %v551_v25 }
 0x1fa   : > { %870 = vmatprep.mubr.f32.mxu0 %v1518_v0  ;;  %959 = vmatprep.mubr.f32.mxu1 %v1518_v0 }
 0x1fd   : > { %1306 = vmatmul.mubr.msk.f32.gmra.mrb[14].mxu0 %vm569_vm1, %v552_v26  ;;  %1310 = vmatmul.mubr.msk.f32.gmra.mrb[14].mxu1 %vm569_vm1, %v552_v26 }
 0x1fe   : > { %1086 = vmatprep.mubr.f32.mxu0 %v1518_v0  ;;  %1157 = vmatprep.mubr.f32.mxu1 %v1518_v0 }
 0x25b   : > { %v1017_v25 = vpop.permute.xlu0 %1016 }
 0x2c4   : > { %v854_v29 = vpop.f32.mrb[8].mxu0  ;;  %v943_v30 = vpop.f32.mrb[8].mxu1 }
 0x2c5   : > { %v856_v31 = vpop.f32.mrb[9].mxu0  ;;  %v945_v32 = vpop.f32.mrb[9].mxu1  ;;  %v982_v34 = vadd.f32 %v968_v28, %v854_v29  ;;  %v984_v35 = vadd.f32 %v968_v28, %v943_v30 }
 0x2c6   : > { %v983_v37 = vadd.f32 %v968_v28, %v856_v31  ;;  %v985_v38 = vadd.f32 %v968_v28, %v945_v32 }
 0x2c7   : > { %v998_v1 = vmax.f32 %v982_v34, 0.0  ;;  %v1000_v43 = vmax.f32 %v984_v35, 0.0 }
 0x2c8   : > { %v860_v39 = vpop.f32.mrb[10].mxu0  ;;  %v949_v4 = vpop.f32.mrb[10].mxu1  ;;  %v999_v46 = vmax.f32 %v983_v37, 0.0  ;;  %v1001_v47 = vmax.f32 %v985_v38, 0.0 }
 0x2c9   : > { %v986_v40 = vadd.f32 %v972_v33, %v860_v39  ;;  %v988_v3 = vadd.f32 %v972_v33, %v949_v4  ;;  %v862_v0 = vpop.f32.mrb[11].mxu0  ;;  %v951_v41 = vpop.f32.mrb[11].mxu1 }
 0x2ca   : > { %v987_v5 = vadd.f32 %v972_v33, %v862_v0  ;;  %v989_v42 = vadd.f32 %v972_v33, %v951_v41 }
 0x2cb   : > { %v1002_v44 = vmax.f32 %v986_v40, 0.0  ;;  %v1004_v45 = vmax.f32 %v988_v3, 0.0 }
 0x2cc   : > { %v1003_v48 = vmax.f32 %v987_v5, 0.0  ;;  %v1005_v49 = vmax.f32 %v989_v42, 0.0  ;;  %v866_v50 = vpop.f32.mrb[12].mxu0  ;;  %v955_v51 = vpop.f32.mrb[12].mxu1 }
 0x2cd   : > { %v1357_v52 = vpack.c.bf16 %v1002_v44, %v998_v1  ;;  %v1365_v53 = vpack.c.bf16 %v1004_v45, %v1000_v43  ;;  %v868_v54 = vpop.f32.mrb[13].mxu0  ;;  %v957_v55 = vpop.f32.mrb[13].mxu1  ;;  %v990_v58 = vadd.f32 %v976_v36, %v866_v50  ;;  %v992_v59 = vadd.f32 %v976_v36, %v955_v51 }
 0x2ce   : > { %v1355_v56 = vpack.c.bf16 %v1003_v48, %v999_v46  ;;  %v1363_v57 = vpack.c.bf16 %v1005_v49, %v1001_v47  ;;  %v991_v61 = vadd.f32 %v976_v36, %v868_v54  ;;  %v993_v62 = vadd.f32 %v976_v36, %v957_v55 }
 0x2cf   : > { %v1006_v12 = vmax.f32 %v990_v58, 0.0  ;;  %v1008_v13 = vmax.f32 %v992_v59, 0.0 }
 0x2d0   : > { %v872_v63 = vpop.f32.mrb[14].mxu0  ;;  %v961_v2 = vpop.f32.mrb[14].mxu1  ;;  %1356 = vmatprep.subr.bf16.mxu0 %v1355_v56  ;;  %1364 = vmatprep.subr.bf16.mxu1 %v1363_v57  ;;  %v1007_v16 = vmax.f32 %v991_v61, 0.0  ;;  %v1009_v17 = vmax.f32 %v993_v62, 0.0 }
 0x2d1   : > { %v994_v6 = vadd.f32 %v980_v60, %v872_v63  ;;  %v996_v7 = vadd.f32 %v980_v60, %v961_v2  ;;  %v874_v8 = vpop.f32.mrb[15].mxu0  ;;  %v963_v9 = vpop.f32.mrb[15].mxu1  ;;  %1358 = vmatpush1.bf16.msra.mxu0 %v1357_v52  ;;  %1366 = vmatpush1.bf16.msra.mxu1 %v1365_v53 }
 0x2d2   : > { %v995_v10 = vadd.f32 %v980_v60, %v874_v8  ;;  %v997_v11 = vadd.f32 %v980_v60, %v963_v9 }
 0x2d3   : > { %v1010_v14 = vmax.f32 %v994_v6, 0.0  ;;  %v1012_v15 = vmax.f32 %v996_v7, 0.0 }
 0x2d4   : > { %v1011_v18 = vmax.f32 %v995_v10, 0.0  ;;  %v1013_v19 = vmax.f32 %v997_v11, 0.0 }
 0x2d5   : > { %v1361_v20 = vpack.c.bf16 %v1010_v14, %v1006_v12  ;;  %v1369_v21 = vpack.c.bf16 %v1012_v15, %v1008_v13 }
 0x2d6   : > { %v1359_v22 = vpack.c.bf16 %v1011_v18, %v1007_v16  ;;  %v1367_v23 = vpack.c.bf16 %v1013_v19, %v1009_v17 }
 0x2d8   : > { %1360 = vmatprep.subr.bf16.mxu0 %v1359_v22  ;;  %1368 = vmatprep.subr.bf16.mxu1 %v1367_v23 }
 0x2d9   : > { %1362 = vmatpush1.bf16.msra.mxu0 %v1361_v20  ;;  %1370 = vmatpush1.bf16.msra.mxu1 %v1369_v21 }
 0x2dc   : > { %1311 = vmatmul.mubr.msk.f32.vlgmr.msra.gmra.mrb[24].mxu0 %vm569_vm1, %v1014_v24  ;;  %1312 = vmatmul.mubr.msk.f32.vlgmr.msra.gmra.mrb[24].mxu1 %vm569_vm1, %v1014_v24 }
 0x3af   : > { %v1088_v26 = vpop.f32.mrb[24].mxu0  ;;  %v1159_v27 = vpop.f32.mrb[24].mxu1 }
 0x3b0   : > { %v1089_v28 = vadd.f32 %v1088_v26, %v1017_v25  ;;  %v1160_v29 = vadd.f32 %v1159_v27, %v1017_v25  ;;  %v1090_v30 = vpop.f32.mrb[25].mxu0  ;;  %v1161_v31 = vpop.f32.mrb[25].mxu1 }
 0x3b1   : > { %v1091_v32 = vadd.f32 %v1090_v30, %v1017_v25  ;;  %v1162_v33 = vadd.f32 %v1161_v31, %v1017_v25 }
 0x3b2   : > { %v1313_v34 = vmul.f32 -1.442695, %v1089_v28  ;;  %v1315_v35 = vmul.f32 -1.442695, %v1160_v29 }
 0x3b3   : > { %v1314_v36 = vmul.f32 -1.442695, %v1091_v32  ;;  %v1316_v37 = vmul.f32 -1.442695, %v1162_v33 }
 0x3b4   : > { %1438 = vpow2.f32 %v1313_v34 }
 0x3b5   : > { %1440 = vpow2.f32 %v1315_v35 }
 0x3b6   : > { %1442 = vpow2.f32 %v1314_v36 }
 0x3b7   : > { %1444 = vpow2.f32 %v1316_v37 }
 0x3be   : > { %v1439_v38 = vpop.eup %1438 }
 0x3bf   : > { %v1441_v39 = vpop.eup %1440  ;;  %v1176_v4 = vadd.f32 1.0, %v1439_v38 }
 0x3c0   : > { %v1443_v40 = vpop.eup %1442  ;;  %v1178_v3 = vadd.f32 1.0, %v1441_v39 }
 0x3c1   : > { %v1445_v0 = vpop.eup %1444  ;;  %1446 = vrcp.f32 %v1176_v4  ;;  %v1177_v41 = vadd.f32 1.0, %v1443_v40 }
 0x3c2   : > { %1448 = vrcp.f32 %v1178_v3  ;;  %v1179_v5 = vadd.f32 1.0, %v1445_v0 }
 0x3c3   : > { %1450 = vrcp.f32 %v1177_v41 }
 0x3c4   : > { %1452 = vrcp.f32 %v1179_v5 }
 0x3cb   : > { %v1447_v42 = vpop.eup %1446 }
 0x3cc   : > { %v1449_v1 = vpop.eup %1448 }
 0x3cd   : > { %v1451_v43 = vpop.eup %1450 }
 0x3ce   : > { %v1453_v44 = vpop.eup %1452  ;;  %v1192_v45 = vcombine.low %v1447_v42, %v1451_v43 }
 0x3cf   : > { %v1193_v46 = vcombine.low %v1449_v1, %v1453_v44 }
 0x3d0   : > { %1196 = vst [vmem:[%s218_s7] sm:$0x77] %v1192_v45 }
 0x3d1   : > { %1197 = vst [vmem:[%s218_s7 + $0x8] sm:$0x77] %v1193_v46 }
 0x3d2   : > { %1467 = shalt.err (!%p1464_p3)
}
 0x3d3   : > { %s1468_s16 = scalar_lea.hbm %s1763_s11, 256  ;;  %s1472_s25 = scalar_lea.hbm %s1810_s5, 512 }
 0x3d4   : > { %p1469_p4 = scmp.ne.s32.totalorder %s1763_s11, %s1468_s16  ;;  %p1473_p9 = scmp.lt.u32.totalorder %s1763_s11, %s1810_s5 }
 0x3d5   : > { %p1474_p10 = scmp.lt.u32.totalorder %s1472_s25, %s1468_s16  ;;  %p1476_p12 = scmp.lt.u32.totalorder %s1468_s16, %s1763_s11 }
 0x3d6   : > { %p1470_p7 = pnand %p1469_p4, %p1592_p5 }
 0x3d7   : > { %p1475_p11 = por %p1474_p10, %p1473_p9 }
 0x3d8   : > { %p1471_p8 = pneg %p1470_p7 }
 0x3d9   : > { %p1477_p13 = por %p1476_p12, %p1475_p11 }
 0x3db   : > { %p1478_p0 = pnand %p1477_p13, %p1471_p8 }
 0x3dd   : > { %1481 = shalt.err (!%p1478_p0)
}
 0x3de   : > { %1387 = dma.vmem_to_hbm [thread:$0]  (%p1592_p5), %s1765_s8, 256, %s1763_s11, %s1199_s12  }
 0x3df PF: > { %p1393_p1 = scmp.ge.s32.totalorder %s1516_s21, 2  ;;  %s1225_s6 = sand.u32 1, %s1504_s18  }
 0x3e0   : > { %s1226_s7 = scalar_lea.sflag [#allocation3], %s1225_s6 }
 0x3e1   : > { %p1390_p2 = pnand %p1393_p1, %p1596_p6 }
 0x3e3   : > { %1499 = dma.done.wait (!%p1390_p2), %s1226_s7, 256  }
 0x3e4   : > { %1501 = vsyncadd (!%p1390_p2), %s1226_s7, 4294967040  ;;  %p15_p3 = scmp.ge.s32.totalorder %s1579_s24, 4   ;;  %s1813_s18 = smov %s1508_s19 }
 0x3e5   : > { %s1814_s19 = smov %s1512_s20  ;;  %s1815_s20 = smov %s1590_s27 }
 0x3e6   : > { %s1816_s21 = smov %s1579_s24  ;;  %17 = sbr.rel (!%p15_p3) target bundleno = 3 (0x3), region = 75 }
 0x3ed   :  { %1231 = vsyncpa [#allocation3], 1 }
 0x3ee   :  { %1233 = vsyncpa [#allocation3 + $0x1], 1 }

</bundles_post_ra>
